<compile_context>
chip_gen: v7x
topology: tpu7x:2x2x1
jax: 0.10.0
libtpu: 0.0.40
codegen_flags: <defaults>
</compile_context>

<pallas_src>
import functools

import jax
import jax.numpy as jnp
from jax.experimental import pallas as pl
from jax.experimental.pallas import tpu as pltpu

_LN2 = 0.6931471805599453


def _jsd_kernel(p_ref, q_ref, out_ref, acc_ref):
    i = pl.program_id(1)  # inner (reduction) axis

    @pl.when(i == 0)
    def _init():
        acc_ref[...] = jnp.zeros_like(acc_ref)

    p = p_ref[...].astype(jnp.float32)
    q = q_ref[...].astype(jnp.float32)
    s = p + q
    # p*(log p - log m) + q*(log q - log m), with log m = log(s) - ln2
    term = p * jnp.log(p) + q * jnp.log(q) - s * (jnp.log(s) - jnp.float32(_LN2))

    tn, d = term.shape  # static
    # Reduce only over the row-block axis (pure VALU adds, no cross-lane work).
    acc_ref[...] += term.reshape(tn // 8, 8, d).sum(axis=0)

    @pl.when(i == pl.num_programs(1) - 1)
    def _finalize():
        # Single cross-sublane reduce per outer block.
        out_ref[...] = jnp.sum(acc_ref[...], axis=0, keepdims=True)


def _round_up(x, m):
    return ((x + m - 1) // m) * m


def jsd(p, q):
    """Jensen-Shannon divergence, matching the PyTorch JSD module forward."""
    d = p.shape[-1]
    p2 = p.reshape(-1, d)
    q2 = q.reshape(-1, d)
    n = p2.shape[0]
    assert q2.shape == (n, d), "p and q must flatten to the same (N, D)"

    # --- tile selection: largest multiple-of-8 row tile within a VMEM budget.
    # ~4 MiB per input tile => 2 inputs x 2 pipeline buffers ~= 16 MiB, which
    # fits every generation (incl. v7x's 64 MiB VMEM) with headroom.
    per_tile_budget = 4 * 1024 * 1024
    tn = (per_tile_budget // (4 * d)) // 8 * 8
    tn = max(8, min(tn, 4096))
    tn = min(tn, _round_up(n, 8))  # never bigger than the (padded) input

    # --- grid: outer "parallel" chunks (2 TCs on v7x), inner reduction blocks.
    n_blocks = pl.cdiv(n, tn)
    n_outer = 2 if n_blocks >= 2 else 1
    n_inner = pl.cdiv(n_blocks, n_outer)
    n_pad = n_outer * n_inner * tn

    if n_pad != n:
        # Pad rows with 1.0 for both p and q: p==q => term is exactly 0.
        pad = n_pad - n
        p2 = jnp.concatenate([p2, jnp.ones((pad, d), p2.dtype)], axis=0)
        q2 = jnp.concatenate([q2, jnp.ones((pad, d), q2.dtype)], axis=0)

    in_map = lambda o, i: (o * n_inner + i, 0)

    partials = pl.pallas_call(
        _jsd_kernel,
        out_shape=jax.ShapeDtypeStruct((n_outer, d), jnp.float32),
        grid_spec=pltpu.PrefetchScalarGridSpec(
            num_scalar_prefetch=0,
            grid=(n_outer, n_inner),
            in_specs=[
                pl.BlockSpec((tn, d), in_map),
                pl.BlockSpec((tn, d), in_map),
            ],
            out_specs=pl.BlockSpec((1, d), lambda o, i: (o, 0)),
            scratch_shapes=[pltpu.VMEM((8, d), jnp.float32)],
        ),
        compiler_params=pltpu.CompilerParams(
            dimension_semantics=("parallel", "arbitrary"),
            vmem_limit_bytes=32 * 1024 * 1024,
        ),
    )(p2, q2)

    # Final cross-block/lane reduce + 0.5 * batchmean scale (N = original rows).
    return jnp.sum(partials) * (0.5 / n)


def jsd_reference(p, q):
    d = p.shape[-1]
    p2 = p.reshape(-1, d).astype(jnp.float32)
    q2 = q.reshape(-1, d).astype(jnp.float32)
    n = p2.shape[0]
    log_m = jnp.log(0.5 * (p2 + q2))
    kl_pm = jnp.sum(p2 * (jnp.log(p2) - log_m)) / n
    kl_qm = jnp.sum(q2 * (jnp.log(q2) - log_m)) / n
    return 0.5 * (kl_pm + kl_qm)


if __name__ == "__main__":
    key = jax.random.PRNGKey(0)
    k1, k2, k3, k4 = jax.random.split(key, 4)

    # Small shapes consistent with the module: batch=2, seq=8, hidden=128
    # (forward flattens to (N=16, D=128)).
    B, S, D = 2, 8, 128
    p = jax.nn.softmax(jax.random.normal(k1, (B, S, D), dtype=jnp.float32), axis=-1)
    q = jax.nn.softmax(jax.random.normal(k2, (B, S, D), dtype=jnp.float32), axis=-1)

    out = jsd(p, q)
    jax.block_until_ready(out)
    ref = jsd_reference(p, q)
    assert jnp.allclose(out, ref, rtol=1e-5, atol=1e-6), (out, ref)

    # Second shape: N not a multiple of 8 exercises the padded-rows path.
    N2, D2 = 10, 256
    p2 = jax.nn.softmax(jax.random.normal(k3, (N2, D2), dtype=jnp.float32), axis=-1)
    q2 = jax.nn.softmax(jax.random.normal(k4, (N2, D2), dtype=jnp.float32), axis=-1)
    out2 = jsd(p2, q2)
    jax.block_until_ready(out2)
    ref2 = jsd_reference(p2, q2)
    assert jnp.allclose(out2, ref2, rtol=1e-5, atol=1e-6), (out2, ref2)

    print("KERNEL_OK")
</pallas_src>

<mosaic_0001>
module attributes {stable_mosaic.version = 11 : i64} {
  func.func @_jsd_kernel(%arg0: i32, %arg1: i32, %arg2: memref<16x128xf32, #tpu.memory_space<vmem>>, %arg3: memref<16x128xf32, #tpu.memory_space<vmem>>, %arg4: memref<1x128xf32, #tpu.memory_space<vmem>>, %arg5: memref<8x128xf32, #tpu.memory_space<vmem>>) attributes {dimension_semantics = [#tpu.dimension_semantics<parallel>, #tpu.dimension_semantics<arbitrary>], iteration_bounds = array<i64: 1, 1>, scalar_prefetch = 0 : i64, scratch_operands = 1 : i64, tpu.core_type = #tpu.core_type<tc>, window_params = [{transform_indices = @transform_0, window_bounds = array<i64: 16, 128>}, {transform_indices = @transform_1, window_bounds = array<i64: 16, 128>}, {transform_indices = @transform_2, window_bounds = array<i64: 1, 128>}]} {
    %c0_i32 = arith.constant 0 : i32
    %0 = arith.cmpi eq, %arg1, %c0_i32 : i32
    %1 = arith.extui %0 : i1 to i32
    %c0_i32_0 = arith.constant 0 : i32
    %2 = arith.cmpi ne, %1, %c0_i32_0 : i32
    scf.if %2 {
      %cst_11 = arith.constant 0.000000e+00 : f32
      %24 = vector.broadcast %cst_11 : f32 to vector<8x128xf32>
      %c0_12 = arith.constant 0 : index
      %c0_13 = arith.constant 0 : index
      %25 = vector.load %arg5[%c0_12, %c0_13] : memref<8x128xf32, #tpu.memory_space<vmem>>, vector<8x128xf32>
      tpu.vector_store %arg5[%c0_12, %c0_13], %24 {strides = array<i32>} : memref<8x128xf32, #tpu.memory_space<vmem>>, vector<8x128xf32>,
    } else {
    }
    %c0 = arith.constant 0 : index
    %c0_1 = arith.constant 0 : index
    %3 = vector.load %arg2[%c0, %c0_1] : memref<16x128xf32, #tpu.memory_space<vmem>>, vector<16x128xf32>
    %c0_2 = arith.constant 0 : index
    %c0_3 = arith.constant 0 : index
    %4 = vector.load %arg3[%c0_2, %c0_3] : memref<16x128xf32, #tpu.memory_space<vmem>>, vector<16x128xf32>
    %5 = arith.addf %3, %4 : vector<16x128xf32>
    %6 = math.log %3 : vector<16x128xf32>
    %7 = arith.mulf %3, %6 : vector<16x128xf32>
    %8 = math.log %4 : vector<16x128xf32>
    %9 = arith.mulf %4, %8 : vector<16x128xf32>
    %10 = arith.addf %7, %9 : vector<16x128xf32>
    %11 = math.log %5 : vector<16x128xf32>
    %cst = arith.constant 0.693147182 : f32
    %12 = vector.broadcast %cst : f32 to vector<16x128xf32>
    %13 = arith.subf %11, %12 : vector<16x128xf32>
    %14 = arith.mulf %5, %13 : vector<16x128xf32>
    %15 = arith.subf %10, %14 : vector<16x128xf32>
    %c0_4 = arith.constant 0 : index
    %c0_5 = arith.constant 0 : index
    %16 = vector.load %arg5[%c0_4, %c0_5] : memref<8x128xf32, #tpu.memory_space<vmem>>, vector<8x128xf32>
    %17 = vector.shape_cast %15 : vector<16x128xf32> to vector<2x8x128xf32>
    %cst_6 = arith.constant dense<0.000000e+00> : vector<8x128xf32>
    %18 = vector.multi_reduction <add>, %17, %cst_6 [0] : vector<2x8x128xf32> to vector<8x128xf32>
    %19 = arith.addf %16, %18 : vector<8x128xf32>
    %c0_7 = arith.constant 0 : index
    %c0_8 = arith.constant 0 : index
    %20 = vector.load %arg5[%c0_7, %c0_8] : memref<8x128xf32, #tpu.memory_space<vmem>>, vector<8x128xf32>
    tpu.vector_store %arg5[%c0_7, %c0_8], %19 {strides = array<i32>} : memref<8x128xf32, #tpu.memory_space<vmem>>, vector<8x128xf32>,
    %c0_i32_9 = arith.constant 0 : i32
    %21 = arith.cmpi eq, %arg1, %c0_i32_9 : i32
    %22 = arith.extui %21 : i1 to i32
    %c0_i32_10 = arith.constant 0 : i32
    %23 = arith.cmpi ne, %22, %c0_i32_10 : i32
    scf.if %23 {
      %c0_11 = arith.constant 0 : index
      %c0_12 = arith.constant 0 : index
      %24 = vector.load %arg5[%c0_11, %c0_12] : memref<8x128xf32, #tpu.memory_space<vmem>>, vector<8x128xf32>
      %cst_13 = arith.constant dense<0.000000e+00> : vector<128xf32>
      %25 = vector.multi_reduction <add>, %24, %cst_13 [0] : vector<8x128xf32> to vector<128xf32>
      %26 = vector.shape_cast %25 : vector<128xf32> to vector<1x128xf32>
      %c0_14 = arith.constant 0 : index
      %c0_15 = arith.constant 0 : index
      %27 = vector.load %arg4[%c0_14, %c0_15] : memref<1x128xf32, #tpu.memory_space<vmem>>, vector<1x128xf32>
      tpu.vector_store %arg4[%c0_14, %c0_15], %26 {strides = array<i32>} : memref<1x128xf32, #tpu.memory_space<vmem>>, vector<1x128xf32>,
    } else {
    }
    return
  }
  func.func @transform_0(%arg0: i32, %arg1: i32) -> (i32, i32) {
    %c1_i32 = arith.constant 1 : i32
    %0 = arith.muli %arg0, %c1_i32 : i32
    %1 = arith.addi %0, %arg1 : i32
    %c0_i32 = arith.constant 0 : i32
    %c0_i32_0 = arith.constant 0 : i32
    return %1, %c0_i32 : i32, i32
  }
  func.func @transform_1(%arg0: i32, %arg1: i32) -> (i32, i32) {
    %c1_i32 = arith.constant 1 : i32
    %0 = arith.muli %arg0, %c1_i32 : i32
    %1 = arith.addi %0, %arg1 : i32
    %c0_i32 = arith.constant 0 : i32
    %c0_i32_0 = arith.constant 0 : i32
    return %1, %c0_i32 : i32, i32
  }
  func.func @transform_2(%arg0: i32, %arg1: i32) -> (i32, i32) {
    %c0_i32 = arith.constant 0 : i32
    %c0_i32_0 = arith.constant 0 : i32
    return %arg0, %c0_i32 : i32, i32
  }
}

</mosaic_0001>

<bundles_post_ra>
// kernel: tpu_custom_call.1
= control target key start
LH: loop header
LB: loop body
LE: loop exit
PB: predicated region body
PF: predicated region fallthrough
CT: control target
= control target key end

     0   :  { %7 = vsyncpa [#allocation4], 0  ;;  %s265_s0 = inlined_call_operand.hbm [shape: f32[16,128], index: 0, kind: input, shape index: {}]   ;;  %s266_s1 = inlined_call_operand.hbm [shape: f32[16,128], index: 1, kind: input, shape index: {}]   ;;  %s267_s2 = inlined_call_operand.hbm [shape: f32[1,128], index: 2, kind: output, shape index: {}]  }
   0x1   :  { %8 = vsyncpa [#allocation7], 0 }
   0x2   :  { %9 = vsyncpa [#allocation5], 0  ;;  %s209_s9 = smov [#allocation3]   ;;  %s137_s13 = scalar_lea.hbm %s265_s0, 256 }
   0x3   :  { %s19_s10 = sshll.u32 %s209_s9, 4  ;;  %p138_p0 = scmp.ne.s32.totalorder %s265_s0, %s137_s13  ;;  %s20_s10 = int_to_ptr.vmem [resolvable:$true] %s19_s10 }
   0x4   :  { %p141_p1 = scmp.lt.u32.totalorder %s137_s13, %s265_s0 }
   0x6   :  { %p143_p2 = pnand %p141_p1, %p138_p0 }
   0x8   :  { %146 = shalt.err (!%p143_p2)
}
   0x9   :  { %s147_s18 = scalar_lea.vmem %s20_s10, 256  ;;  %p152_p4 = scmp.lt.s32.totalorder %s20_s10, %s20_s10 }
   0xa   :  { %p148_p3 = scmp.ne.s32.totalorder %s20_s10, %s147_s18  ;;  %p153_p5 = scmp.lt.s32.totalorder %s147_s18, %s147_s18 }
   0xc   :  { %p154_p6 = por %p153_p5, %p152_p4 }
   0xe   :  { %p155_p7 = pnand %p154_p6, %p148_p3 }
  0x10   :  { %158 = shalt.err (!%p155_p7)
}
  0x11   :  { %s210_s19 = smov 128   ;;  %s211_s20 = smov 8  }
  0x12   :  { %25 = dma.hbm_to_vmem [thread:$0]  %s265_s0, 256, %s20_s10, [#allocation4], %s210_s19, %s210_s19, %s211_s20  }
  0x13   :  { %s212_s23 = smov [#allocation6]   ;;  %s159_s27 = scalar_lea.hbm %s266_s1, 256 }
  0x14   :  { %s35_s24 = sshll.u32 %s212_s23, 4  ;;  %p160_p8 = scmp.ne.s32.totalorder %s266_s1, %s159_s27  ;;  %s36_s24 = int_to_ptr.vmem [resolvable:$true] %s35_s24 }
  0x15   :  { %p163_p9 = scmp.lt.u32.totalorder %s159_s27, %s266_s1 }
  0x17   :  { %p165_p10 = pnand %p163_p9, %p160_p8 }
  0x19   :  { %168 = shalt.err (!%p165_p10)
}
  0x1a   :  { %s169_s4 = scalar_lea.vmem %s36_s24, 256  ;;  %p174_p12 = scmp.lt.s32.totalorder %s36_s24, %s36_s24 }
  0x1b   :  { %p170_p11 = scmp.ne.s32.totalorder %s36_s24, %s169_s4  ;;  %p175_p13 = scmp.lt.s32.totalorder %s169_s4, %s169_s4 }
  0x1d   :  { %p176_p0 = por %p175_p13, %p174_p12 }
  0x1f   :  { %p177_p1 = pnand %p176_p0, %p170_p11 }
  0x21   :  { %180 = shalt.err (!%p177_p1)
}
  0x22   :  { %41 = dma.hbm_to_vmem [thread:$0]  %s266_s1, 256, %s36_s24, [#allocation7], %s210_s19, %s210_s19, %s211_s20  }
  0x23   :  { %203 = dma.done.wait [#allocation4], 256  }
  0x24   :  { %204 = vsyncadd [#allocation4], 4294967040 }
  0x25   :  { %205 = dma.done.wait [#allocation7], 256  }
  0x26   :  { %206 = vsyncadd [#allocation7], 4294967040  ;;  %v57_v0 = vld [vmem:[#allocation3] sm:$0xff]  ;;  %v58_v1 = vld [vmem:[#allocation3 + $0x8] sm:$0xff]  ;;  %s213_s1 = smov [#allocation8]  }
  0x27   :  { %v59_v2 = vld [vmem:[#allocation6] sm:$0xff]  ;;  %v60_v3 = vld [vmem:[#allocation6 + $0x8] sm:$0xff]  ;;  %125 = vlog2.f32 %v57_v0  ;;  %s108_s6 = sshll.u32 %s213_s1, 4  ;;  %s109_s6 = int_to_ptr.vmem [resolvable:$true] %s108_s6 }
  0x28   :  { %v61_v4 = vadd.f32 %v59_v2, %v57_v0  ;;  %v62_v5 = vadd.f32 %v60_v3, %v58_v1  ;;  %127 = vlog2.f32 %v58_v1  ;;  %s181_s7 = scalar_lea.vmem %s109_s6, 16  ;;  %s185_s8 = scalar_lea.vmem %s109_s6, 32 }
  0x29   :  { %129 = vlog2.f32 %v59_v2  ;;  %p182_p2 = scmp.ne.s32.totalorder %s109_s6, %s181_s7  ;;  %p186_p3 = scmp.lt.s32.totalorder %s109_s6, %s109_s6 }
  0x2a   :  { %131 = vlog2.f32 %v60_v3  ;;  %p187_p4 = scmp.lt.s32.totalorder %s185_s8, %s181_s7 }
  0x2b   :  { %133 = vlog2.f32 %v61_v4 }
  0x2c   :  { %135 = vlog2.f32 %v62_v5  ;;  %p188_p5 = por %p187_p4, %p186_p3 }
  0x2e   :  { %p189_p6 = pnand %p188_p5, %p182_p2 }
  0x31   :  { %v126_v6 = vpop.eup %125 }
  0x32   :  { %v128_v7 = vpop.eup %127  ;;  %v64_v8 = vmul.f32 0.6931472, %v126_v6 }
  0x33   :  { %v130_v9 = vpop.eup %129  ;;  %v66_v10 = vmul.f32 0.6931472, %v128_v7 }
  0x34   :  { %v132_v11 = vpop.eup %131  ;;  %v67_v12 = vmul.f32 %v64_v8, %v57_v0  ;;  %v70_v13 = vmul.f32 0.6931472, %v130_v9 }
  0x35   :  { %v134_v14 = vpop.eup %133  ;;  %v68_v15 = vmul.f32 %v66_v10, %v58_v1  ;;  %v72_v16 = vmul.f32 0.6931472, %v132_v11 }
  0x36   :  { %v136_v17 = vpop.eup %135  ;;  %v73_v18 = vmul.f32 %v70_v13, %v59_v2  ;;  %v78_v19 = vmul.f32 0.6931472, %v134_v14 }
  0x37   :  { %v74_v20 = vmul.f32 %v72_v16, %v60_v3  ;;  %v80_v21 = vmul.f32 0.6931472, %v136_v17 }
  0x38   :  { %v75_v22 = vadd.f32 %v73_v18, %v67_v12  ;;  %v118_v23 = vadd.f32 -0.6931472, %v78_v19 }
  0x39   :  { %v76_v24 = vadd.f32 %v74_v20, %v68_v15  ;;  %v119_v25 = vadd.f32 -0.6931472, %v80_v21 }
  0x3a   :  { %v83_v26 = vmul.f32 %v118_v23, %v61_v4 }
  0x3b   :  { %v84_v27 = vmul.f32 %v119_v25, %v62_v5 }
  0x3c   :  { %v85_v28 = vsub.f32 %v75_v22, %v83_v26 }
  0x3d   :  { %v86_v29 = vsub.f32 %v76_v24, %v84_v27 }
  0x3f   :  { %v88_v30 = vadd.f32 %v86_v29, %v85_v28 }
  0x41   :  { %v95_v31 = vrot.slane %v88_v30, 4 }
  0x43   :  { %v96_v32 = vadd.f32 %v95_v31, %v88_v30 }
  0x45   :  { %v97_v33 = vrot.slane %v96_v32, 2 }
  0x47   :  { %v98_v34 = vadd.f32 %v97_v33, %v96_v32 }
  0x49   :  { %v99_v35 = vrot.slane %v98_v34, 1 }
  0x4b   :  { %v100_v36 = vadd.f32 %v99_v35, %v98_v34 }
  0x4d   :  { %101 = vst [vmem:[#allocation8] sm:$0x1] %v100_v36 }
  0x4e   :  { %192 = shalt.err (!%p189_p6)
}
  0x4f   :  { %s193_s11 = scalar_lea.hbm %s267_s2, 16 }
  0x50   :  { %p194_p7 = scmp.ne.s32.totalorder %s267_s2, %s193_s11  ;;  %p197_p8 = scmp.lt.u32.totalorder %s193_s11, %s267_s2 }
  0x52   :  { %p199_p9 = pnand %p197_p8, %p194_p7 }
  0x54   :  { %202 = shalt.err (!%p199_p9)
}
  0x55   :  { %111 = dma.vmem_to_hbm [thread:$0]  %s109_s6, 16, %s267_s2, [#allocation5]  }
  0x56   :  { %207 = dma.done.wait [#allocation5], 16  }
  0x57   :  { %208 = vsyncadd [#allocation5], 4294967280 }
  0x58   :  { %115 = vsyncpa [#allocation4], 1 }
  0x59   :  { %116 = vsyncpa [#allocation7], 1 }
  0x5a   :  { %117 = vsyncpa [#allocation5], 1 }

</bundles_post_ra>
